<compile_context>
chip_gen: v5e
topology: v5e:2x2
jax: 0.10.0
libtpu: 0.0.40
codegen_flags: <defaults>
</compile_context>

<pallas_src>
import functools

import numpy as np

import jax
import jax.numpy as jnp
from jax import lax
from jax.experimental import pallas as pl
from jax.experimental.pallas import tpu as pltpu


# ----------------------------------------------------------------------------
# Deterministic synthetic network structure (compile-time constants).
# ----------------------------------------------------------------------------
INPUT_NODES = (-1, -2, -3, -4)          # NEAT input keys
OUTPUT_NODES = (0, 1)                   # NEAT output keys
# node_evals in topological order: (key, bias, ((src_key, weight), ...))
NODE_EVALS = (
    (2, 0.10, ((-1, 0.5), (-2, -0.8))),
    (3, -0.20, ((-2, 1.2), (-3, 0.3), (-4, -0.5))),
    (0, 0.05, ((2, 0.9), (3, -1.1), (-1, 0.4))),
    (1, -0.30, ((3, 0.7), (-4, 0.6))),
)


def _round_up(x, m):
    return ((x + m - 1) // m) * m


def _validate_feed_forward(input_nodes, node_evals):
    """The level-grouped kernel assumes strictly topological (feed-forward) node_evals."""
    known = set(input_nodes)
    for key, _, links in node_evals:
        for src, _ in links:
            if src not in known:
                raise ValueError(
                    f"node {key} reads node {src} before it is defined "
                    "(node_evals is not feed-forward / topologically ordered)")
        known.add(key)


def _build_level_matrices(input_nodes, output_nodes, node_evals):
    """Bake the NEAT graph into small dense f32 matrices.

    Node values live in V (n_slots, batch_tile): slot 0..n_in-1 = inputs, then one slot per
    eval node.  Each topological level becomes one (n_slots, n_slots) weight matrix whose rows
    are non-zero only for that level's nodes, so `V += relu(W @ V + b)` evaluates the level
    without disturbing any other slot.
    """
    n_in, n_out = len(input_nodes), len(output_nodes)

    slot = {k: i for i, k in enumerate(input_nodes)}
    for idx, (key, _, _) in enumerate(node_evals):
        slot[key] = n_in + idx
    n_slots = _round_up(max(n_in + len(node_evals), 1), 8)     # full sublane tiles
    n_out_pad = _round_up(max(n_out, 1), 8)

    # Group eval nodes into topological levels (same values as sequential evaluation).
    level_of = {k: 0 for k in input_nodes}
    level_nodes = []
    for key, bias, links in node_evals:
        lvl = 1 + max((level_of[s] for s, _ in links), default=0)
        level_of[key] = lvl
        while len(level_nodes) < lvl:
            level_nodes.append([])
        level_nodes[lvl - 1].append((key, bias, links))

    e_in = np.zeros((n_slots, n_in), np.float32)               # V_init = E_in @ x^T
    for i, k in enumerate(input_nodes):
        e_in[slot[k], i] = 1.0

    level_mats = []
    for nodes in level_nodes:
        w = np.zeros((n_slots, n_slots), np.float32)
        b = np.zeros((n_slots, 1), np.float32)
        for key, bias, links in nodes:
            r = slot[key]
            b[r, 0] = np.float32(bias)
            for src, wt in links:
                w[r, slot[src]] += np.float32(wt)
        level_mats.append((w, b))

    q_out = np.zeros((n_out_pad, n_slots), np.float32)         # gathers output slots
    for o, k in enumerate(output_nodes):
        if k in slot:                                          # never-evaluated outputs -> zeros
            q_out[o, slot[k]] = 1.0
    return e_in, level_mats, q_out


# ----------------------------------------------------------------------------
# Pallas kernel.
#   x_ref : (bt, n_in)   batch-major input block (lane = node index)
#   o_ref : (bt, n_out)  batch-major output block
# Weight refs (tiny, constant per step): e_in, (w_l, b_l) per level, q_out.
# ----------------------------------------------------------------------------
def _ffn_kernel(x_ref, e_ref, *refs, n_levels, n_out):
    out_ref = refs[-1]
    q_ref = refs[-2]

    x = x_ref[...]                                             # (bt, n_in)

    # Orientation flip on the MXU: V[slot, b] = input value.  (q @ k^T - style contraction.)
    v = lax.dot_general(e_ref[...], x, (((1,), (1,)), ((), ())),
                        preferred_element_type=jnp.float32)    # (n_slots, bt), lane = batch

    # One MXU matmul + ReLU + accumulate per topological level (static unroll).
    for lvl in range(n_levels):
        w = refs[2 * lvl][...]                                 # (n_slots, n_slots)
        b = refs[2 * lvl + 1][...]                             # (n_slots, 1)
        h = jnp.dot(w, v, preferred_element_type=jnp.float32)  # (n_slots, bt)
        v = v + jnp.maximum(h + b, 0.0)                        # other slots: relu(0)=0

    # Gather output slots (rows) then flip back to batch-major for the store (XLU transpose).
    out_nm = jnp.dot(q_ref[...], v, preferred_element_type=jnp.float32)   # (n_out_pad, bt)
    out_ref[...] = jnp.transpose(out_nm)[:, :n_out]            # (bt, n_out)


def make_feed_forward_network(input_nodes, output_nodes, node_evals, *, b_tile_max=4096):
    """Returns a jitted fn: x (B, n_in) float -> (B, n_out) float32."""
    _validate_feed_forward(input_nodes, node_evals)
    n_in, n_out = len(input_nodes), len(output_nodes)

    e_in, level_mats, q_out = _build_level_matrices(input_nodes, output_nodes, node_evals)
    n_levels = len(level_mats)

    weight_arrays = [jnp.asarray(e_in)]
    for w, b in level_mats:
        weight_arrays.append(jnp.asarray(w))
        weight_arrays.append(jnp.asarray(b))
    weight_arrays.append(jnp.asarray(q_out))

    # Batch tile: multiple of 128 rows (BlockSpec constraint), clamped so the lane-padded,
    # double-buffered in/out blocks + temporaries stay well inside v7x's 64 MiB VMEM.
    b_tile_max = max(128, min((int(b_tile_max) // 128) * 128, 8192))

    kernel = functools.partial(_ffn_kernel, n_levels=n_levels, n_out=n_out)

    @jax.jit
    def forward(x):
        if x.ndim != 2 or x.shape[1] != n_in:
            raise ValueError(f"Expected (B, {n_in}) inputs, got {x.shape}")
        B = x.shape[0]
        xp = x.astype(jnp.float32)

        b128 = _round_up(max(B, 1), 128)
        if b128 != B:                                          # pad to next 128 rows only
            xp = jnp.pad(xp, ((0, b128 - B), (0, 0)))

        bt = min(b_tile_max, b128)
        # Keep >=2 grid steps when a single tile would cover everything (v7x megacore sharding).
        if bt == b128 and b128 >= 256 and (b128 // 2) % 128 == 0:
            bt = b128 // 2
        grid = pl.cdiv(b128, bt)

        # VMEM budget: in/out blocks are lane-padded to 128 lanes (512 B/row each), x2 for
        # double buffering, plus node-major value matrices and the transposed output (~1 KB/row).
        vmem_bytes = int(max(16 * 1024 * 1024, 4 * 1024 * bt))

        weight_specs = [pl.BlockSpec(a.shape, lambda i: (0, 0)) for a in weight_arrays]

        out = pl.pallas_call(
            kernel,
            grid=(grid,),
            in_specs=[pl.BlockSpec((bt, n_in), lambda i: (i, 0))] + weight_specs,
            out_specs=pl.BlockSpec((bt, n_out), lambda i: (i, 0)),
            out_shape=jax.ShapeDtypeStruct((b128, n_out), jnp.float32),
            compiler_params=pltpu.CompilerParams(
                dimension_semantics=("parallel",),             # pipeline + megacore on v7x
                vmem_limit_bytes=vmem_bytes,
            ),
        )(xp, *weight_arrays)

        return out[:B]                                         # (B, n_out), like torch.cat(dim=1)

    return forward


# ----------------------------------------------------------------------------
# Pure-JAX reference (mirrors the PyTorch forward loop exactly).
# ----------------------------------------------------------------------------
def reference_forward(x, input_nodes, output_nodes, node_evals):
    x = jnp.asarray(x, jnp.float32)
    values = {k: x[:, i:i + 1] for i, k in enumerate(input_nodes)}
    for key, bias, links in node_evals:
        acc = jnp.full((x.shape[0], 1), jnp.float32(bias))
        for src, w in links:
            acc = acc + values[src] * jnp.float32(w)
        values[key] = jnp.maximum(acc, 0.0)
    cols = [values[k] if k in values else jnp.zeros((x.shape[0], 1), jnp.float32)
            for k in output_nodes]
    return jnp.concatenate(cols, axis=1)


if __name__ == "__main__":
    key = jax.random.PRNGKey(0)

    # Default maker: large tiles; B=1000 -> padded to 1024 -> 2 x 512-row grid steps.
    fwd = make_feed_forward_network(INPUT_NODES, OUTPUT_NODES, NODE_EVALS)
    # Small-tile maker: forces a 3-step grid at B=300 (padded to 384, 128-row tiles).
    fwd_small = make_feed_forward_network(INPUT_NODES, OUTPUT_NODES, NODE_EVALS,
                                          b_tile_max=128)

    for f, batch in ((fwd, 8), (fwd, 1000), (fwd_small, 300)):
        x = jax.random.normal(jax.random.fold_in(key, batch),
                              (batch, len(INPUT_NODES)), dtype=jnp.float32)
        out = jax.block_until_ready(f(x))
        ref = reference_forward(x, INPUT_NODES, OUTPUT_NODES, NODE_EVALS)
        assert out.shape == (batch, len(OUTPUT_NODES)), out.shape
        assert jnp.allclose(out, ref, atol=1e-4, rtol=1e-4), (batch, out, ref)

    print("KERNEL_OK")
</pallas_src>

<mosaic_0001>
module attributes {stable_mosaic.version = 11 : i64} {
  func.func @_ffn_kernel(%arg0: i32, %arg1: memref<128x4xf32, #tpu.memory_space<vmem>>, %arg2: memref<8x4xf32, #tpu.memory_space<vmem>>, %arg3: memref<8x8xf32, #tpu.memory_space<vmem>>, %arg4: memref<8x1xf32, #tpu.memory_space<vmem>>, %arg5: memref<8x8xf32, #tpu.memory_space<vmem>>, %arg6: memref<8x1xf32, #tpu.memory_space<vmem>>, %arg7: memref<8x8xf32, #tpu.memory_space<vmem>>, %arg8: memref<128x2xf32, #tpu.memory_space<vmem>>) attributes {dimension_semantics = [#tpu.dimension_semantics<parallel>], iteration_bounds = array<i64: 1>, scalar_prefetch = 0 : i64, scratch_operands = 0 : i64, tpu.core_type = #tpu.core_type<tc>, window_params = [{transform_indices = @transform_0, window_bounds = array<i64: 128, 4>}, {pipeline_mode = #tpu.pipeline_mode<synchronous>, transform_indices = @transform_1, window_bounds = array<i64: 8, 4>}, {pipeline_mode = #tpu.pipeline_mode<synchronous>, transform_indices = @transform_2, window_bounds = array<i64: 8, 8>}, {pipeline_mode = #tpu.pipeline_mode<synchronous>, transform_indices = @transform_3, window_bounds = array<i64: 8, 1>}, {pipeline_mode = #tpu.pipeline_mode<synchronous>, transform_indices = @transform_4, window_bounds = array<i64: 8, 8>}, {pipeline_mode = #tpu.pipeline_mode<synchronous>, transform_indices = @transform_5, window_bounds = array<i64: 8, 1>}, {pipeline_mode = #tpu.pipeline_mode<synchronous>, transform_indices = @transform_6, window_bounds = array<i64: 8, 8>}, {transform_indices = @transform_7, window_bounds = array<i64: 128, 2>}]} {
    %c0 = arith.constant 0 : index
    %c0_0 = arith.constant 0 : index
    %0 = vector.load %arg1[%c0, %c0_0] : memref<128x4xf32, #tpu.memory_space<vmem>>, vector<128x4xf32>
    %c0_1 = arith.constant 0 : index
    %c0_2 = arith.constant 0 : index
    %1 = vector.load %arg2[%c0_1, %c0_2] : memref<8x4xf32, #tpu.memory_space<vmem>>, vector<8x4xf32>
    %cst = arith.constant dense<0.000000e+00> : vector<8x128xf32>
    %2 = tpu.matmul %1, %0, %cst {dimension_numbers = #tpu.dot_dimension_numbers<[1], [1], [0], [0], [0, 0, 1, 0], [], []>} : vector<8x4xf32>, vector<128x4xf32>, vector<8x128xf32> -> vector<8x128xf32>
    %c0_3 = arith.constant 0 : index
    %c0_4 = arith.constant 0 : index
    %3 = vector.load %arg3[%c0_3, %c0_4] : memref<8x8xf32, #tpu.memory_space<vmem>>, vector<8x8xf32>
    %c0_5 = arith.constant 0 : index
    %c0_6 = arith.constant 0 : index
    %4 = vector.load %arg4[%c0_5, %c0_6] : memref<8x1xf32, #tpu.memory_space<vmem>>, vector<8x1xf32>
    %cst_7 = arith.constant dense<0.000000e+00> : vector<8x128xf32>
    %5 = tpu.matmul %3, %2, %cst_7 {dimension_numbers = #tpu.dot_dimension_numbers<[1], [0], [0], [1], [0, 0, 1, 1], [], []>} : vector<8x8xf32>, vector<8x128xf32>, vector<8x128xf32> -> vector<8x128xf32>
    %6 = vector.broadcast %4 : vector<8x1xf32> to vector<8x128xf32>
    %7 = arith.addf %5, %6 : vector<8x128xf32>
    %cst_8 = arith.constant 0.000000e+00 : f32
    %8 = vector.broadcast %cst_8 : f32 to vector<8x128xf32>
    %9 = arith.maximumf %7, %8 : vector<8x128xf32>
    %10 = arith.addf %2, %9 : vector<8x128xf32>
    %c0_9 = arith.constant 0 : index
    %c0_10 = arith.constant 0 : index
    %11 = vector.load %arg5[%c0_9, %c0_10] : memref<8x8xf32, #tpu.memory_space<vmem>>, vector<8x8xf32>
    %c0_11 = arith.constant 0 : index
    %c0_12 = arith.constant 0 : index
    %12 = vector.load %arg6[%c0_11, %c0_12] : memref<8x1xf32, #tpu.memory_space<vmem>>, vector<8x1xf32>
    %cst_13 = arith.constant dense<0.000000e+00> : vector<8x128xf32>
    %13 = tpu.matmul %11, %10, %cst_13 {dimension_numbers = #tpu.dot_dimension_numbers<[1], [0], [0], [1], [0, 0, 1, 1], [], []>} : vector<8x8xf32>, vector<8x128xf32>, vector<8x128xf32> -> vector<8x128xf32>
    %14 = vector.broadcast %12 : vector<8x1xf32> to vector<8x128xf32>
    %15 = arith.addf %13, %14 : vector<8x128xf32>
    %cst_14 = arith.constant 0.000000e+00 : f32
    %16 = vector.broadcast %cst_14 : f32 to vector<8x128xf32>
    %17 = arith.maximumf %15, %16 : vector<8x128xf32>
    %18 = arith.addf %10, %17 : vector<8x128xf32>
    %c0_15 = arith.constant 0 : index
    %c0_16 = arith.constant 0 : index
    %19 = vector.load %arg7[%c0_15, %c0_16] : memref<8x8xf32, #tpu.memory_space<vmem>>, vector<8x8xf32>
    %cst_17 = arith.constant dense<0.000000e+00> : vector<8x128xf32>
    %20 = tpu.matmul %19, %18, %cst_17 {dimension_numbers = #tpu.dot_dimension_numbers<[1], [0], [0], [1], [0, 0, 1, 1], [], []>} : vector<8x8xf32>, vector<8x128xf32>, vector<8x128xf32> -> vector<8x128xf32>
    %21 = tpu.transpose %20, [1, 0] : vector<8x128xf32> -> vector<128x8xf32>
    %22 = vector.extract_strided_slice %21 {offsets = [0, 0], sizes = [128, 2], strides = [1, 1]} : vector<128x8xf32> to vector<128x2xf32>
    %c0_18 = arith.constant 0 : index
    %c0_19 = arith.constant 0 : index
    %23 = vector.load %arg8[%c0_18, %c0_19] : memref<128x2xf32, #tpu.memory_space<vmem>>, vector<128x2xf32>
    tpu.vector_store %arg8[%c0_18, %c0_19], %22 {strides = array<i32>} : memref<128x2xf32, #tpu.memory_space<vmem>>, vector<128x2xf32>,
    return
  }
  func.func @transform_0(%arg0: i32) -> (i32, i32) {
    %c0_i32 = arith.constant 0 : i32
    %c0_i32_0 = arith.constant 0 : i32
    return %arg0, %c0_i32 : i32, i32
  }
  func.func @transform_1(%arg0: i32) -> (i32, i32) {
    %c0_i32 = arith.constant 0 : i32
    %c0_i32_0 = arith.constant 0 : i32
    %c0_i32_1 = arith.constant 0 : i32
    return %c0_i32, %c0_i32_0 : i32, i32
  }
  func.func @transform_2(%arg0: i32) -> (i32, i32) {
    %c0_i32 = arith.constant 0 : i32
    %c0_i32_0 = arith.constant 0 : i32
    %c0_i32_1 = arith.constant 0 : i32
    return %c0_i32, %c0_i32_0 : i32, i32
  }
  func.func @transform_3(%arg0: i32) -> (i32, i32) {
    %c0_i32 = arith.constant 0 : i32
    %c0_i32_0 = arith.constant 0 : i32
    %c0_i32_1 = arith.constant 0 : i32
    return %c0_i32, %c0_i32_0 : i32, i32
  }
  func.func @transform_4(%arg0: i32) -> (i32, i32) {
    %c0_i32 = arith.constant 0 : i32
    %c0_i32_0 = arith.constant 0 : i32
    %c0_i32_1 = arith.constant 0 : i32
    return %c0_i32, %c0_i32_0 : i32, i32
  }
  func.func @transform_5(%arg0: i32) -> (i32, i32) {
    %c0_i32 = arith.constant 0 : i32
    %c0_i32_0 = arith.constant 0 : i32
    %c0_i32_1 = arith.constant 0 : i32
    return %c0_i32, %c0_i32_0 : i32, i32
  }
  func.func @transform_6(%arg0: i32) -> (i32, i32) {
    %c0_i32 = arith.constant 0 : i32
    %c0_i32_0 = arith.constant 0 : i32
    %c0_i32_1 = arith.constant 0 : i32
    return %c0_i32, %c0_i32_0 : i32, i32
  }
  func.func @transform_7(%arg0: i32) -> (i32, i32) {
    %c0_i32 = arith.constant 0 : i32
    %c0_i32_0 = arith.constant 0 : i32
    return %arg0, %c0_i32 : i32, i32
  }
}

</mosaic_0001>

<bundles_post_ra>
// kernel: forward.1
= control target key start
LH: loop header
LB: loop body
LE: loop exit
PB: predicated region body
PF: predicated region fallthrough
CT: control target
= control target key end

     0   :  { %vm43_vm0 = vcmask 31744   ;;  %v280_v18 = vmov 0   ;;  %vm122_vm1 = vcmask 64512   ;;  %vm236_vm2 = vcmask 15360   ;;  %s471_s0 = inlined_call_operand.vmem [shape: f32[128,4], index: 0, kind: input, shape index: {}]   ;;  %s472_s1 = inlined_call_operand.vmem [shape: f32[8,4], index: 1, kind: input, shape index: {}]   ;;  %s473_s3 = inlined_call_operand.vmem [shape: f32[8,1], index: 3, kind: input, shape index: {}]   ;;  %s474_s5 = inlined_call_operand.vmem [shape: f32[8,1], index: 5, kind: input, shape index: {}]   ;;  %s475_s2 = inlined_call_operand.vmem [shape: f32[8,8], index: 2, kind: input, shape index: {}]   ;;  %s476_s4 = inlined_call_operand.vmem [shape: f32[8,8], index: 4, kind: input, shape index: {}]   ;;  %s477_s6 = inlined_call_operand.vmem [shape: f32[8,8], index: 6, kind: input, shape index: {}]   ;;  %s478_s7 = inlined_call_operand.vmem [shape: f32[128,2], index: 7, kind: output, shape index: {}]  }
   0x1   :  { %v41_v0 = vld [vmem:[%s471_s0 + $0x78] sm:$0xff]  ;;  %v40_v1 = vld [vmem:[%s471_s0 + $0x70] sm:$0xff]  ;;  %v39_v2 = vld [vmem:[%s471_s0 + $0x68] sm:$0xff]  ;;  %279 = vset.pattern.permute.xlu0 %v280_v18 }
   0x2   :  { %257 = vmatpush.xpose.msk.msra.mxu0 %vm43_vm0, %v41_v0  ;;  %v38_v3 = vld [vmem:[%s471_s0 + $0x60] sm:$0xff]  ;;  %v37_v4 = vld [vmem:[%s471_s0 + $0x58] sm:$0xff]  ;;  %v36_v5 = vld [vmem:[%s471_s0 + $0x50] sm:$0xff] }
   0x3   :  { %v35_v6 = vld [vmem:[%s471_s0 + $0x48] sm:$0xff]  ;;  %v34_v7 = vld [vmem:[%s471_s0 + $0x40] sm:$0xff]  ;;  %v33_v8 = vld [vmem:[%s471_s0 + $0x38] sm:$0xff] }
   0x4   :  { %v32_v9 = vld [vmem:[%s471_s0 + $0x30] sm:$0xff]  ;;  %v31_v10 = vld [vmem:[%s471_s0 + $0x28] sm:$0xff]  ;;  %v30_v11 = vld [vmem:[%s471_s0 + $0x20] sm:$0xff] }
   0x5   :  { %v29_v12 = vld [vmem:[%s471_s0 + $0x18] sm:$0xff]  ;;  %v28_v13 = vld [vmem:[%s471_s0 + $0x10] sm:$0xff]  ;;  %v27_v14 = vld [vmem:[%s471_s0 + $0x8] sm:$0xff] }
   0x6   :  { %258 = vmatpush.xpose.msk.msra.mxu0 %vm43_vm0, %v40_v1  ;;  %v26_v15 = vld [vmem:[%s471_s0] sm:$0xff] }
   0x7   :  { %v42_v16 = vld [vmem:[%s472_s1] sm:$0xff] }
   0x8   :  { %v116_v17 = vld [vmem:[%s473_s3] sm:$0xff] }
   0x9   :  { %119 = vperm.xlu0 %279, %v116_v17   ;;  %v149_v19 = vld [vmem:[%s474_s5] sm:$0xff] }
   0xa   :  { %259 = vmatpush.xpose.msk.msra.mxu0 %vm43_vm0, %v39_v2  ;;  %v115_v20 = vld [vmem:[%s475_s2] sm:$0xff] }
   0xb   :  { %v148_v27 = vld [vmem:[%s476_s4] sm:$0xff] }
   0xc   :  { %v180_v33 = vld [vmem:[%s477_s6] sm:$0xff] }
   0xe   :  { %260 = vmatpush.xpose.msk.msra.mxu0 %vm43_vm0, %v38_v3 }
  0x11   :  { %152 = vperm.xlu0 %279, %v149_v19  }
  0x12   :  { %261 = vmatpush.xpose.msk.msra.mxu0 %vm43_vm0, %v37_v4 }
  0x16   :  { %262 = vmatpush.xpose.msk.msra.mxu0 %vm43_vm0, %v36_v5 }
  0x1a   :  { %263 = vmatpush.xpose.msk.msra.mxu0 %vm43_vm0, %v35_v6 }
  0x1e   :  { %264 = vmatpush.xpose.msk.msra.mxu0 %vm43_vm0, %v34_v7 }
  0x22   :  { %265 = vmatpush.xpose.msk.msra.mxu0 %vm43_vm0, %v33_v8 }
  0x26   :  { %266 = vmatpush.xpose.msk.msra.mxu0 %vm43_vm0, %v32_v9 }
  0x2a   :  { %267 = vmatpush.xpose.msk.msra.mxu0 %vm43_vm0, %v31_v10 }
  0x2e   :  { %268 = vmatpush.xpose.msk.msra.mxu0 %vm43_vm0, %v30_v11 }
  0x32   :  { %269 = vmatpush.xpose.msk.msra.mxu0 %vm43_vm0, %v29_v12 }
  0x36   :  { %270 = vmatpush.xpose.msk.msra.mxu0 %vm43_vm0, %v28_v13 }
  0x3a   :  { %271 = vmatpush.xpose.msk.msra.mxu0 %vm43_vm0, %v27_v14 }
  0x3e   :  { %272 = vmatpush.xpose.msk.msra.mxu0 %vm43_vm0, %v26_v15 }
  0x41   :  { %273 = vmatmul.msk.f32.vlgmr.msra.gmra.mxu0 %vm43_vm0, %v42_v16 }
  0x7b   :  { %v120_v22 = vpop.permute.xlu0 %119 }
  0x83   :  { %v153_v28 = vpop.permute.xlu0 %152 }
  0xbe   :  { %v112_v21 = vpop.f32.mrf.mxu0 }
  0xbf   :  { %141 = vmatpush.msra.mxu1 %v112_v21 }
  0xc0   :  { %274 = vmatmul.msk.f32.vlgmr.msra.gmra.mxu1 %vm122_vm1, %v115_v20 }
 0x13d   :  { %v143_v23 = vpop.f32.mrf.mxu1 }
 0x13e   :  { %v144_v24 = vadd.f32 %v143_v23, %v120_v22 }
 0x140   :  { %v146_v25 = vmax.f32 %v144_v24, 0.0 }
 0x142   :  { %v147_v26 = vadd.f32 %v146_v25, %v112_v21 }
 0x144   :  { %173 = vmatpush.msra.mxu2 %v147_v26 }
 0x145   :  { %275 = vmatmul.msk.f32.vlgmr.msra.gmra.mxu2 %vm122_vm1, %v148_v27 }
 0x1c8   :  { %v175_v29 = vpop.f32.mrf.mxu2 }
 0x1c9   :  { %v176_v30 = vadd.f32 %v175_v29, %v153_v28 }
 0x1cb   :  { %v178_v31 = vmax.f32 %v176_v30, 0.0 }
 0x1cd   :  { %v179_v32 = vadd.f32 %v178_v31, %v147_v26 }
 0x1cf   :  { %199 = vmatpush.msra.mxu3 %v179_v32 }
 0x1d0   :  { %276 = vmatmul.msk.f32.vlgmr.msra.gmra.mxu3 %vm122_vm1, %v180_v33 }
 0x253   :  { %v201_v34 = vpop.f32.mrf.mxu3 }
 0x254   :  { %204 = vxpose.xlu1.b32.start.end [1/1] (short) %v201_v34, 128 }
 0x2f8   :  { %v220_v35 = vpop.trf.xlu1 }
 0x2f9   :  { %237 = vst.msk [vmem:[%s478_s7] sm:$0xff] %vm236_vm2, %v220_v35 }
 0x300   :  { %v221_v36 = vpop.trf.xlu1 }
 0x301   :  { %238 = vst.msk [vmem:[%s478_s7 + $0x8] sm:$0xff] %vm236_vm2, %v221_v36 }
 0x308   :  { %v222_v37 = vpop.trf.xlu1 }
 0x309   :  { %239 = vst.msk [vmem:[%s478_s7 + $0x10] sm:$0xff] %vm236_vm2, %v222_v37 }
 0x310   :  { %v223_v38 = vpop.trf.xlu1 }
 0x311   :  { %240 = vst.msk [vmem:[%s478_s7 + $0x18] sm:$0xff] %vm236_vm2, %v223_v38 }
 0x318   :  { %v224_v39 = vpop.trf.xlu1 }
 0x319   :  { %241 = vst.msk [vmem:[%s478_s7 + $0x20] sm:$0xff] %vm236_vm2, %v224_v39 }
 0x320   :  { %v225_v40 = vpop.trf.xlu1 }
 0x321   :  { %242 = vst.msk [vmem:[%s478_s7 + $0x28] sm:$0xff] %vm236_vm2, %v225_v40 }
 0x328   :  { %v226_v41 = vpop.trf.xlu1 }
 0x329   :  { %243 = vst.msk [vmem:[%s478_s7 + $0x30] sm:$0xff] %vm236_vm2, %v226_v41 }
 0x330   :  { %v227_v42 = vpop.trf.xlu1 }
 0x331   :  { %244 = vst.msk [vmem:[%s478_s7 + $0x38] sm:$0xff] %vm236_vm2, %v227_v42 }
 0x338   :  { %v228_v43 = vpop.trf.xlu1 }
 0x339   :  { %245 = vst.msk [vmem:[%s478_s7 + $0x40] sm:$0xff] %vm236_vm2, %v228_v43 }
 0x340   :  { %v229_v44 = vpop.trf.xlu1 }
 0x341   :  { %246 = vst.msk [vmem:[%s478_s7 + $0x48] sm:$0xff] %vm236_vm2, %v229_v44 }
 0x348   :  { %v230_v45 = vpop.trf.xlu1 }
 0x349   :  { %247 = vst.msk [vmem:[%s478_s7 + $0x50] sm:$0xff] %vm236_vm2, %v230_v45 }
 0x350   :  { %v231_v46 = vpop.trf.xlu1 }
 0x351   :  { %248 = vst.msk [vmem:[%s478_s7 + $0x58] sm:$0xff] %vm236_vm2, %v231_v46 }
 0x358   :  { %v232_v47 = vpop.trf.xlu1 }
 0x359   :  { %249 = vst.msk [vmem:[%s478_s7 + $0x60] sm:$0xff] %vm236_vm2, %v232_v47 }
 0x360   :  { %v233_v48 = vpop.trf.xlu1 }
 0x361   :  { %250 = vst.msk [vmem:[%s478_s7 + $0x68] sm:$0xff] %vm236_vm2, %v233_v48 }
 0x368   :  { %v234_v49 = vpop.trf.xlu1 }
 0x369   :  { %251 = vst.msk [vmem:[%s478_s7 + $0x70] sm:$0xff] %vm236_vm2, %v234_v49 }
 0x370   :  { %v235_v50 = vpop.trf.xlu1 }
 0x371   :  { %252 = vst.msk [vmem:[%s478_s7 + $0x78] sm:$0xff] %vm236_vm2, %v235_v50 }

</bundles_post_ra>
